<compile_context>
chip_gen: v6e
topology: v6e:2x2x1
jax: 0.10.0
libtpu: 0.0.40
codegen_flags: <defaults>
</compile_context>

<pallas_src>
import functools

import jax
import jax.numpy as jnp
from jax import lax
from jax.experimental import pallas as pl
from jax.experimental.pallas import tpu as pltpu

ALPHA = 0.25    # gathered in the PyTorch forward but never used in the loss
GAMMA = 2.0
LANE = 128
SUBLANE = 8


def _round_up(x, m):
    return (x + m - 1) // m * m


def _tpu_config():
    """(max_block_rows, num_tensorcores, vmem_limit_bytes) per device generation."""
    kind = ""
    try:
        kind = jax.devices()[0].device_kind.lower()
    except Exception:
        pass
    if "v7" in kind or "tpu7" in kind:
        # 2 TCs/chip; 64 MiB physical VMEM -> stay inside the default 32 MiB scope.
        return 4096, 2, None
    if "v6" in kind:
        # 1 TC; 128 MiB physical VMEM -> big blocks + raised scoped limit.
        return 8192, 1, 64 * 1024 * 1024
    if "v5e" in kind or "v5 lite" in kind or "v5lite" in kind or "lite" in kind:
        # 1 TC; default scoped VMEM is only 16 MiB -> bump it modestly.
        return 4096, 1, 32 * 1024 * 1024
    # Unknown / other TPUs: conservative defaults.
    return 2048, 1, None


def _focal_loss_kernel(pred_ref, target_ref, out_ref, *, gamma, n_elems,
                       block_rows, exact_cover, binary_targets):
    s = pl.program_id(1)

    @pl.when(s == 0)
    def _init():
        out_ref[...] = jnp.zeros_like(out_ref)

    x = pred_ref[...].astype(jnp.float32)
    t = target_ref[...].astype(jnp.float32)

    if binary_targets:
        # Hard {0,1} targets (what the module's alpha-gather implies):
        #   z   = x * (2t - 1)
        #   bce = softplus(-z) = max(-z, 0) + log1p(exp(-|z|))   (PyTorch's stable form)
        #   pt  = exp(-bce)    = sigmoid(z), reusing the SAME exp(-|z|)
        # -> 2 EUP transcendentals per element instead of 3.
        z = x * (2.0 * t - 1.0)
        e = jnp.exp(-jnp.abs(z))
        bce = jnp.maximum(-z, 0.0) + jnp.log1p(e)
        pt = jnp.where(z >= 0.0, 1.0, e) / (1.0 + e)   # exact divide (no approx rcp)
    else:
        # General (soft-target) path: 3 transcendentals per element.
        e = jnp.exp(-jnp.abs(x))
        bce = jnp.maximum(x, 0.0) - x * t + jnp.log1p(e)
        pt = jnp.exp(-bce)

    omp = 1.0 - pt
    if gamma == 2.0:
        w = omp * omp                       # avoid float pow -> no extra EUP ops
    elif float(gamma) == int(gamma):
        w = lax.integer_pow(omp, int(gamma))
    else:
        w = omp ** jnp.float32(gamma)
    focal = w * bce

    if not exact_cover:
        # Mask out-of-range rows / the ragged tail. Row/column compares only
        # (no flat-index multiply -> no int32 overflow for huge n). The select
        # picks a literal 0.0, so garbage/NaN in unread VMEM never propagates.
        row0 = (pl.program_id(0) * pl.num_programs(1) + s) * block_rows
        rid = lax.broadcasted_iota(jnp.int32, focal.shape, 0) + row0
        full_rows = n_elems // LANE
        rem = n_elems % LANE
        if rem == 0:
            mask = rid < full_rows
        else:
            cid = lax.broadcasted_iota(jnp.int32, focal.shape, 1)
            mask = jnp.logical_or(rid < full_rows,
                                  jnp.logical_and(rid == full_rows, cid < rem))
        focal = jnp.where(mask, focal, 0.0)

    # Fold the block into one vreg-shaped (8,128) partial sum using a few
    # independent add chains (keeps the 4 VALU slots fed on large blocks).
    groups = block_rows // SUBLANE
    f3 = focal.reshape(groups, SUBLANE, LANE)
    if groups % 4 == 0:
        n_chains = 4
    elif groups % 2 == 0:
        n_chains = 2
    else:
        n_chains = 1
    per = groups // n_chains
    chains = [jnp.sum(f3[i * per:(i + 1) * per], axis=0) for i in range(n_chains)]
    while len(chains) > 1:
        chains = [chains[i] + chains[i + 1] for i in range(0, len(chains), 2)]
    out_ref[...] += chains[0]


def focal_loss_pallas(pred, target, gamma=GAMMA, binary_targets=True):
    """pred, target: same shape (e.g. NCHW). Returns scalar mean focal loss."""
    assert pred.shape == target.shape
    n = pred.size

    max_block_rows, num_cores, vmem_limit = _tpu_config()

    def _prep(a):
        # Keep the native dtype (the kernel casts in-register); only bools are
        # promoted since 1-bit streams are awkward for the DMA engine.
        if a.dtype == jnp.bool_:
            a = a.astype(jnp.float32)
        if n % LANE == 0:
            return a.reshape(n // LANE, LANE)          # pure reshape, no extra HBM pass
        flat = a.reshape(-1)
        flat = jnp.pad(flat, (0, _round_up(n, LANE) - n))   # only the ragged tail
        return flat.reshape(-1, LANE)

    p2 = _prep(pred)
    t2 = _prep(target)
    rows = p2.shape[0]

    # Block rows: multiple of 16 (safe for bf16 packing), capped per device.
    block_rows = min(max_block_rows, _round_up(rows, 2 * SUBLANE))
    total_blocks = pl.cdiv(rows, block_rows)
    if total_blocks < num_cores:          # don't split a tiny problem across cores
        num_cores = 1
    steps = pl.cdiv(total_blocks, num_cores)

    # Mask is compiled out entirely when the grid exactly covers the valid data.
    exact_cover = (n % LANE == 0
                   and rows % block_rows == 0
                   and num_cores * steps == total_blocks)

    if num_cores * steps == total_blocks:
        in_map = lambda c, s: (c * steps + s, 0)
    else:
        # Clamp surplus grid steps onto the last valid block (their contribution
        # is zeroed by the in-kernel mask, which uses the *logical* position).
        last_block = total_blocks - 1
        in_map = lambda c, s: (jnp.minimum(c * steps + s, last_block), 0)

    kernel = functools.partial(
        _focal_loss_kernel, gamma=gamma, n_elems=n, block_rows=block_rows,
        exact_cover=exact_cover, binary_targets=binary_targets)

    partials = pl.pallas_call(
        kernel,
        out_shape=jax.ShapeDtypeStruct((num_cores * SUBLANE, LANE), jnp.float32),
        grid_spec=pltpu.PrefetchScalarGridSpec(
            num_scalar_prefetch=0,
            grid=(num_cores, steps),
            in_specs=[
                pl.BlockSpec((block_rows, LANE), in_map),
                pl.BlockSpec((block_rows, LANE), in_map),
            ],
            # Per-core (8,128) partial sums; block resident across the s axis.
            out_specs=pl.BlockSpec((SUBLANE, LANE), lambda c, s: (c, 0)),
        ),
        compiler_params=pltpu.CompilerParams(
            dimension_semantics=("parallel", "arbitrary"),
            vmem_limit_bytes=vmem_limit),
    )(p2, t2)

    # Single cross-lane/core reduce + mean, done once in the wrapper.
    return jnp.sum(partials) / jnp.float32(n)


def focal_loss_ref(pred, target, gamma=GAMMA):
    x = pred.reshape(-1).astype(jnp.float32)
    t = target.reshape(-1).astype(jnp.float32)
    bce = jnp.maximum(x, 0.0) - x * t + jnp.log1p(jnp.exp(-jnp.abs(x)))
    pt = jnp.exp(-bce)
    return jnp.mean((1.0 - pt) ** gamma * bce)


if __name__ == "__main__":
    key = jax.random.PRNGKey(0)
    k1, k2 = jax.random.split(key)
    # NCHW: batch=2, channels=4, spatial=16x16 -> 2048 elements
    pred = jax.random.normal(k1, (2, 4, 16, 16), dtype=jnp.float32)
    # binary targets in {0, 1} (as the gather on alpha of size 2 implies)
    target = jax.random.bernoulli(k2, 0.5, (2, 4, 16, 16)).astype(jnp.float32)

    loss = jax.block_until_ready(focal_loss_pallas(pred, target))
    ref = focal_loss_ref(pred, target)
    assert jnp.allclose(loss, ref, rtol=1e-5, atol=1e-6), (loss, ref)
    print("KERNEL_OK")
</pallas_src>

<mosaic_0001>
module attributes {stable_mosaic.version = 11 : i64} {
  func.func @_focal_loss_kernel(%arg0: i32, %arg1: i32, %arg2: memref<16x128xf32, #tpu.memory_space<vmem>>, %arg3: memref<16x128xf32, #tpu.memory_space<vmem>>, %arg4: memref<8x128xf32, #tpu.memory_space<vmem>>) attributes {dimension_semantics = [#tpu.dimension_semantics<parallel>, #tpu.dimension_semantics<arbitrary>], iteration_bounds = array<i64: 1, 1>, scalar_prefetch = 0 : i64, scratch_operands = 0 : i64, tpu.core_type = #tpu.core_type<tc>, window_params = [{transform_indices = @transform_0, window_bounds = array<i64: 16, 128>}, {transform_indices = @transform_1, window_bounds = array<i64: 16, 128>}, {transform_indices = @transform_2, window_bounds = array<i64: 8, 128>}]} {
    %c0_i32 = arith.constant 0 : i32
    %0 = arith.cmpi eq, %arg1, %c0_i32 : i32
    %1 = arith.extui %0 : i1 to i32
    %c0_i32_0 = arith.constant 0 : i32
    %2 = arith.cmpi ne, %1, %c0_i32_0 : i32
    scf.if %2 {
      %cst_18 = arith.constant 0.000000e+00 : f32
      %40 = vector.broadcast %cst_18 : f32 to vector<8x128xf32>
      %c0_19 = arith.constant 0 : index
      %c0_20 = arith.constant 0 : index
      %41 = vector.load %arg4[%c0_19, %c0_20] : memref<8x128xf32, #tpu.memory_space<vmem>>, vector<8x128xf32>
      tpu.vector_store %arg4[%c0_19, %c0_20], %40 {strides = array<i32>} : memref<8x128xf32, #tpu.memory_space<vmem>>, vector<8x128xf32>,
    } else {
    }
    %c0 = arith.constant 0 : index
    %c0_1 = arith.constant 0 : index
    %3 = vector.load %arg2[%c0, %c0_1] : memref<16x128xf32, #tpu.memory_space<vmem>>, vector<16x128xf32>
    %c0_2 = arith.constant 0 : index
    %c0_3 = arith.constant 0 : index
    %4 = vector.load %arg3[%c0_2, %c0_3] : memref<16x128xf32, #tpu.memory_space<vmem>>, vector<16x128xf32>
    %cst = arith.constant 2.000000e+00 : f32
    %5 = vector.broadcast %cst : f32 to vector<16x128xf32>
    %6 = arith.mulf %5, %4 : vector<16x128xf32>
    %cst_4 = arith.constant 1.000000e+00 : f32
    %7 = vector.broadcast %cst_4 : f32 to vector<16x128xf32>
    %8 = arith.subf %6, %7 : vector<16x128xf32>
    %9 = arith.mulf %3, %8 : vector<16x128xf32>
    %10 = math.absf %9 : vector<16x128xf32>
    %cst_5 = arith.constant 0.000000e+00 : f32
    %11 = vector.broadcast %cst_5 : f32 to vector<16x128xf32>
    %12 = arith.subf %11, %10 : vector<16x128xf32>
    %13 = math.exp %12 : vector<16x128xf32>
    %cst_6 = arith.constant 0.000000e+00 : f32
    %14 = vector.broadcast %cst_6 : f32 to vector<16x128xf32>
    %15 = arith.subf %14, %9 : vector<16x128xf32>
    %cst_7 = arith.constant 0.000000e+00 : f32
    %16 = vector.broadcast %cst_7 : f32 to vector<16x128xf32>
    %17 = arith.maximumf %15, %16 : vector<16x128xf32>
    %18 = math.log1p %13 : vector<16x128xf32>
    %19 = arith.addf %17, %18 : vector<16x128xf32>
    %cst_8 = arith.constant 0.000000e+00 : f32
    %20 = vector.broadcast %cst_8 : f32 to vector<16x128xf32>
    %21 = arith.cmpf oge, %9, %20 : vector<16x128xf32>
    %cst_9 = arith.constant 1.000000e+00 : f32
    %22 = vector.broadcast %cst_9 : f32 to vector<16x128xf32>
    %23 = arith.select %21, %22, %13 : vector<16x128xi1>, vector<16x128xf32>
    %cst_10 = arith.constant 1.000000e+00 : f32
    %24 = vector.broadcast %cst_10 : f32 to vector<16x128xf32>
    %25 = arith.addf %24, %13 : vector<16x128xf32>
    %26 = arith.divf %23, %25 : vector<16x128xf32>
    %cst_11 = arith.constant 1.000000e+00 : f32
    %27 = vector.broadcast %cst_11 : f32 to vector<16x128xf32>
    %28 = arith.subf %27, %26 : vector<16x128xf32>
    %29 = arith.mulf %28, %28 : vector<16x128xf32>
    %30 = arith.mulf %29, %19 : vector<16x128xf32>
    %31 = vector.shape_cast %30 : vector<16x128xf32> to vector<2x8x128xf32>
    %32 = vector.extract_strided_slice %31 {offsets = [0, 0, 0], sizes = [1, 8, 128], strides = [1, 1, 1]} : vector<2x8x128xf32> to vector<1x8x128xf32>
    %cst_12 = arith.constant dense<0.000000e+00> : vector<8x128xf32>
    %33 = vector.multi_reduction <add>, %32, %cst_12 [0] : vector<1x8x128xf32> to vector<8x128xf32>
    %34 = vector.extract_strided_slice %31 {offsets = [1, 0, 0], sizes = [1, 8, 128], strides = [1, 1, 1]} : vector<2x8x128xf32> to vector<1x8x128xf32>
    %cst_13 = arith.constant dense<0.000000e+00> : vector<8x128xf32>
    %35 = vector.multi_reduction <add>, %34, %cst_13 [0] : vector<1x8x128xf32> to vector<8x128xf32>
    %36 = arith.addf %33, %35 : vector<8x128xf32>
    %c0_14 = arith.constant 0 : index
    %c0_15 = arith.constant 0 : index
    %37 = vector.load %arg4[%c0_14, %c0_15] : memref<8x128xf32, #tpu.memory_space<vmem>>, vector<8x128xf32>
    %38 = arith.addf %37, %36 : vector<8x128xf32>
    %c0_16 = arith.constant 0 : index
    %c0_17 = arith.constant 0 : index
    %39 = vector.load %arg4[%c0_16, %c0_17] : memref<8x128xf32, #tpu.memory_space<vmem>>, vector<8x128xf32>
    tpu.vector_store %arg4[%c0_16, %c0_17], %38 {strides = array<i32>} : memref<8x128xf32, #tpu.memory_space<vmem>>, vector<8x128xf32>,
    return
  }
  func.func @transform_0(%arg0: i32, %arg1: i32) -> (i32, i32) {
    %c1_i32 = arith.constant 1 : i32
    %0 = arith.muli %arg0, %c1_i32 : i32
    %1 = arith.addi %0, %arg1 : i32
    %c0_i32 = arith.constant 0 : i32
    %c0_i32_0 = arith.constant 0 : i32
    return %1, %c0_i32 : i32, i32
  }
  func.func @transform_1(%arg0: i32, %arg1: i32) -> (i32, i32) {
    %c1_i32 = arith.constant 1 : i32
    %0 = arith.muli %arg0, %c1_i32 : i32
    %1 = arith.addi %0, %arg1 : i32
    %c0_i32 = arith.constant 0 : i32
    %c0_i32_0 = arith.constant 0 : i32
    return %1, %c0_i32 : i32, i32
  }
  func.func @transform_2(%arg0: i32, %arg1: i32) -> (i32, i32) {
    %c0_i32 = arith.constant 0 : i32
    %c0_i32_0 = arith.constant 0 : i32
    return %arg0, %c0_i32 : i32, i32
  }
}

</mosaic_0001>

<bundles_post_ra>
// kernel: tpu_custom_call.1
= control target key start
LH: loop header
LB: loop body
LE: loop exit
PB: predicated region body
PF: predicated region fallthrough
CT: control target
= control target key end

     0   :  { %7 = vsyncpa [#allocation3], 0  ;;  %s258_s0 = inlined_call_operand.hbm [shape: f32[16,128], index: 0, kind: input, shape index: {}]   ;;  %s259_s1 = inlined_call_operand.hbm [shape: f32[16,128], index: 1, kind: input, shape index: {}]   ;;  %s260_s2 = inlined_call_operand.hbm [shape: f32[8,128], index: 2, kind: output, shape index: {}]  }
   0x1   :  { %8 = vsyncpa [#allocation6], 0 }
   0x2   :  { %9 = vsyncpa [#allocation4], 0  ;;  %s223_s9 = smov [#allocation2]  }
   0x3   :  { %s19_s10 = sshll.u32 %s223_s9, 4  ;;  %s20_s10 = int_to_ptr.vmem [resolvable:$true] %s19_s10 }
   0x4   :  { %s165_s11 = scalar_lea.vmem %s20_s10, 256  ;;  %p170_p1 = scmp.lt.s32.totalorder %s20_s10, %s20_s10 }
   0x5   :  { %p166_p0 = scmp.ne.s32.totalorder %s20_s10, %s165_s11  ;;  %p171_p2 = scmp.lt.s32.totalorder %s165_s11, %s165_s11 }
   0x7   :  { %p172_p3 = por %p171_p2, %p170_p1 }
   0x9   :  { %p173_p4 = pnand %p172_p3, %p166_p0 }
   0xb   :  { %176 = shalt.err (!%p173_p4)
}
   0xc   :  { %s224_s12 = smov 128   ;;  %s225_s13 = smov 8  }
   0xd   :  { %25 = dma.hbm_to_vmem [thread:$0]  %s258_s0, 256, %s20_s10, [#allocation3], %s224_s12, %s224_s12, %s225_s13  }
   0xe   :  { %s226_s16 = smov [#allocation5]  }
   0xf   :  { %s35_s17 = sshll.u32 %s226_s16, 4  ;;  %s36_s17 = int_to_ptr.vmem [resolvable:$true] %s35_s17 }
  0x10   :  { %s185_s18 = scalar_lea.vmem %s36_s17, 256  ;;  %p190_p6 = scmp.lt.s32.totalorder %s36_s17, %s36_s17 }
  0x11   :  { %p186_p5 = scmp.ne.s32.totalorder %s36_s17, %s185_s18  ;;  %p191_p7 = scmp.lt.s32.totalorder %s185_s18, %s185_s18 }
  0x13   :  { %p192_p8 = por %p191_p7, %p190_p6 }
  0x15   :  { %p193_p9 = pnand %p192_p8, %p186_p5 }
  0x17   :  { %196 = shalt.err (!%p193_p9)
}
  0x18   :  { %41 = dma.hbm_to_vmem [thread:$0]  %s259_s1, 256, %s36_s17, [#allocation6], %s224_s12, %s224_s12, %s225_s13  }
  0x19   :  { %217 = dma.done.wait [#allocation3], 256  }
  0x1a   :  { %218 = vsyncadd [#allocation3], 4294967040 }
  0x1b   :  { %219 = dma.done.wait [#allocation6], 256  }
  0x1c   :  { %220 = vsyncadd [#allocation6], 4294967040  ;;  %v59_v0 = vld [vmem:[#allocation5] sm:$0xff]  ;;  %v60_v1 = vld [vmem:[#allocation5 + $0x8] sm:$0xff]  ;;  %s227_s0 = smov [#allocation7]  }
  0x1d   :  { %v61_v2 = vmul.f32 2.0, %v59_v0  ;;  %v57_v3 = vld [vmem:[#allocation2] sm:$0xff]  ;;  %v62_v4 = vmul.f32 2.0, %v60_v1  ;;  %v58_v5 = vld [vmem:[#allocation2 + $0x8] sm:$0xff]  ;;  %s127_s1 = sshll.u32 %s227_s0, 4  ;;  %s128_s1 = int_to_ptr.vmem [resolvable:$true] %s127_s1 }
  0x1e   :  { %s197_s21 = scalar_lea.vmem %s128_s1, 128  ;;  %p202_p11 = scmp.lt.s32.totalorder %s128_s1, %s128_s1 }
  0x1f   :  { %v137_v6 = vadd.f32 -1.0, %v61_v2  ;;  %v138_v7 = vadd.f32 -1.0, %v62_v4  ;;  %p198_p10 = scmp.ne.s32.totalorder %s128_s1, %s197_s21  ;;  %p203_p12 = scmp.lt.s32.totalorder %s197_s21, %s197_s21 }
  0x21   :  { %v65_v8 = vmul.f32 %v137_v6, %v57_v3  ;;  %v66_v9 = vmul.f32 %v138_v7, %v58_v5  ;;  %p204_p13 = por %p203_p12, %p202_p11 }
  0x23   :  { %v67_v10 = vand.u32 2147483647, %v65_v8  ;;  %v68_v11 = vand.u32 2147483647, %v66_v9  ;;  %v75_v25 = vsub.f32 0.0, %v65_v8  ;;  %vm99_vm0 = vcmp.ge.f32.partialorder %v65_v8, 0.0  ;;  %p205_p0 = pnand %p204_p13, %p198_p10 }
  0x24   :  { %v76_v27 = vsub.f32 0.0, %v66_v9  ;;  %vm100_vm1 = vcmp.ge.f32.partialorder %v66_v9, 0.0 }
  0x25   :  { %v69_v12 = vsub.f32 0.0, %v67_v10  ;;  %v70_v13 = vsub.f32 0.0, %v68_v11  ;;  %v77_v34 = vmax.f32 %v75_v25, 0.0 }
  0x26   :  { %v78_v38 = vmax.f32 %v76_v27, 0.0 }
  0x27   :  { %v71_v14 = vmul.f32 1.442695, %v69_v12  ;;  %v73_v15 = vmul.f32 1.442695, %v70_v13 }
  0x29   :  { %145 = vpow2.f32 %v71_v14 }
  0x2a   :  { %147 = vpow2.f32 %v73_v15 }
  0x36   :  { %v146_v16 = vpop.eup %145 }
  0x37   :  { %v148_v17 = vpop.eup %147  ;;  %v79_v18 = vadd.f32 1.0, %v146_v16  ;;  %v82_v20 = vmul.f32 -0.5, %v146_v16  ;;  %v85_v23 = vand.u32 2147483647, %v146_v16  ;;  %v101_v32 = vsel %vm99_vm0, 1.0, %v146_v16 }
  0x38   :  { %v88_v19 = vadd.f32 1.0, %v148_v17  ;;  %v91_v21 = vmul.f32 -0.5, %v148_v17  ;;  %v94_v26 = vand.u32 2147483647, %v148_v17  ;;  %v102_v36 = vsel %vm100_vm1, 1.0, %v148_v17 }
  0x39   :  { %149 = vlog2.f32 %v79_v18  ;;  %v83_v22 = vadd.f32 1.0, %v82_v20  ;;  %vm249_vm2 = vcmp.lt.f32.partialorder %v85_v23, 0.0004427343 }
  0x3a   :  { %151 = vlog2.f32 %v88_v19  ;;  %v92_v24 = vadd.f32 1.0, %v91_v21  ;;  %vm95_vm3 = vcmp.lt.f32.partialorder %v94_v26, 0.0004427343 }
  0x3b   :  { %153 = vrcp.f32 %v79_v18  ;;  %v84_v28 = vmul.f32 %v146_v16, %v83_v22 }
  0x3c   :  { %155 = vrcp.f32 %v88_v19  ;;  %v93_v31 = vmul.f32 %v148_v17, %v92_v24 }
  0x46   :  { %v150_v29 = vpop.eup %149 }
  0x47   :  { %v152_v33 = vpop.eup %151  ;;  %v81_v35 = vmul.f32 0.6931472, %v150_v29 }
  0x48   :  { %v154_v37 = vpop.eup %153  ;;  %v90_v39 = vmul.f32 0.6931472, %v152_v33 }
  0x49   :  { %v156_v40 = vpop.eup %155  ;;  %v87_v41 = vsel %vm249_vm2, %v84_v28, %v81_v35  ;;  %v106_v42 = vmul.f32 %v154_v37, %v101_v32 }
  0x4a   :  { %v96_v43 = vsel %vm95_vm3, %v93_v31, %v90_v39  ;;  %v108_v44 = vmul.f32 %v156_v40, %v102_v36  ;;  %v97_v45 = vadd.f32 %v87_v41, %v77_v34 }
  0x4b   :  { %v109_v46 = vsub.f32 1.0, %v106_v42  ;;  %v98_v47 = vadd.f32 %v96_v43, %v78_v38 }
  0x4c   :  { %v110_v48 = vsub.f32 1.0, %v108_v44 }
  0x4d   :  { %v111_v49 = vmul.f32 %v109_v46, %v109_v46 }
  0x4e   :  { %v112_v50 = vmul.f32 %v110_v48, %v110_v48 }
  0x4f   :  { %v113_v51 = vmul.f32 %v111_v49, %v97_v45 }
  0x50   :  { %v114_v52 = vmul.f32 %v112_v50, %v98_v47 }
  0x52   :  { %v117_v53 = vadd.f32 %v114_v52, %v113_v51 }
  0x54   :  { %120 = vst [vmem:[#allocation7] sm:$0xff] %v117_v53 }
  0x55   :  { %208 = shalt.err (!%p205_p0)
}
  0x56   :  { %130 = dma.vmem_to_hbm [thread:$0]  %s128_s1, 128, %s260_s2, [#allocation4]  }
  0x57   :  { %221 = dma.done.wait [#allocation4], 128  }
  0x58   :  { %222 = vsyncadd [#allocation4], 4294967168 }
  0x59   :  { %134 = vsyncpa [#allocation3], 1 }
  0x5a   :  { %135 = vsyncpa [#allocation6], 1 }
  0x5b   :  { %136 = vsyncpa [#allocation4], 1 }

</bundles_post_ra>
